<compile_context>
chip_gen: v5e
topology: v5e:2x2
jax: 0.10.0
libtpu: 0.0.40
codegen_flags: <defaults>
</compile_context>

<pallas_src>
import functools

import jax
import jax.numpy as jnp
from jax.experimental import pallas as pl
from jax.experimental.pallas import tpu as pltpu


def _round_up(v, m):
    return (v + m - 1) // m * m


def _pick_c_tile(C, HW, budget_bytes):
    """Channel tile: multiple of 8, f32 chunk fits budget, prefer divisors of C."""
    c8 = _round_up(C, 8)
    ct_max = max(8, budget_bytes // (HW * 4) // 8 * 8)
    if c8 <= ct_max:
        return c8
    if C % 8 == 0:
        # Prefer a divisor of C (no ragged masking) if it costs < 2x the steps.
        for ct in range(ct_max, ct_max // 2 - 1, -8):
            if ct >= 8 and C % ct == 0:
                return ct
    return ct_max  # ragged last chunk handled by in-kernel masking


def _spatial_attention_kernel(w_ref, x_ref, o_ref, sum_ref, max_ref,
                              avg_pad_ref, max_pad_ref, *,
                              C, CT, W, K, HW, NB, BW, HALO, PVb, ragged):
    # w_ref       : (2*K*K,) f32 conv weights in SMEM (scalar reads)
    # x_ref       : (1, CT, HW) VMEM block — CT channels of one batch element
    # o_ref       : (1, NB, BW) output block (written on the last C step only)
    # sum_ref     : (8, HW) f32 scratch — channel-group running sums
    # max_ref     : (8, HW) f32 scratch — channel-group running maxes
    # avg/max_pad : (NB, 2*PVb+BW) f32 scratch — zero-padded banded maps
    c = pl.program_id(1)
    nc = pl.num_programs(1)
    p = K // 2
    KK = K * K

    # ---- streamed channel reduction into (8, HW) channel-group partials ----
    chunk = x_ref[0].astype(jnp.float32)                        # (CT, HW)
    if ragged:
        # Mask channel rows past C (ragged last chunk / C < 8 padding).
        row = jax.lax.broadcasted_iota(jnp.int32, (CT, 1), 0) + c * CT
        valid_row = row < C
        sum_src = jnp.where(valid_row, chunk, 0.0)
        max_src = jnp.where(valid_row, chunk, -jnp.inf)
    else:
        sum_src = chunk
        max_src = chunk
    gsum = jnp.sum(sum_src.reshape(CT // 8, 8, HW), axis=0)     # (8, HW)
    gmax = jnp.max(max_src.reshape(CT // 8, 8, HW), axis=0)     # (8, HW)

    @pl.when(c == 0)
    def _():
        sum_ref[...] = gsum
        max_ref[...] = gmax

    @pl.when(c > 0)
    def _():
        sum_ref[...] += gsum
        max_ref[...] = jnp.maximum(max_ref[...], gmax)

    # ---- finalize: KxK conv over zero-padded (avg, max) maps + sigmoid ----
    @pl.when(c == nc - 1)
    def _():
        inv_c = jnp.float32(1.0 / C)
        avg = jnp.sum(sum_ref[...], axis=0, keepdims=True) * inv_c   # (1, HW)
        mxv = jnp.max(max_ref[...], axis=0, keepdims=True)           # (1, HW)

        # Scatter the flat maps into NB sublane bands of BW = (H/NB)*W lanes,
        # with p-row halos from the neighbouring bands; zeroed borders emulate
        # PyTorch's zero padding (and keep masked tap reads finite).
        avg_pad_ref[...] = jnp.zeros_like(avg_pad_ref)
        max_pad_ref[...] = jnp.zeros_like(max_pad_ref)
        for s in range(NB):
            lo = s * BW
            avg_pad_ref[s:s + 1, PVb:PVb + BW] = avg[:, lo:lo + BW]
            max_pad_ref[s:s + 1, PVb:PVb + BW] = mxv[:, lo:lo + BW]
            if s > 0:                                   # halo rows above band
                avg_pad_ref[s:s + 1, PVb - HALO:PVb] = avg[:, lo - HALO:lo]
                max_pad_ref[s:s + 1, PVb - HALO:PVb] = mxv[:, lo - HALO:lo]
            if s < NB - 1:                              # halo rows below band
                avg_pad_ref[s:s + 1, PVb + BW:PVb + BW + HALO] = \
                    avg[:, lo + BW:lo + BW + HALO]
                max_pad_ref[s:s + 1, PVb + BW:PVb + BW + HALO] = \
                    mxv[:, lo + BW:lo + BW + HALO]

        # Static K*K tap unroll.  A (dy,dx) tap is a flat shift dy*W+dx within
        # each band; per-column masks kill horizontal row-boundary wraparound;
        # vertical out-of-image taps read the zeroed borders.
        col = jax.lax.broadcasted_iota(jnp.int32, (NB, BW), 1) % W
        acc = jnp.zeros((NB, BW), jnp.float32)
        for dx in range(K):
            dc = dx - p
            part = jnp.zeros((NB, BW), jnp.float32)
            for dy in range(K):
                s0 = PVb + (dy - p) * W + dc                     # static offset
                part = part + w_ref[dy * K + dx] * avg_pad_ref[:, s0:s0 + BW]
                part = part + w_ref[KK + dy * K + dx] * max_pad_ref[:, s0:s0 + BW]
            if dc == 0:
                acc = acc + part
            else:
                valid = (col >= -dc) & (col < W - dc)
                acc = acc + jnp.where(valid, part, 0.0)

        o_ref[0] = jax.nn.sigmoid(acc).astype(o_ref.dtype)


def spatial_attention(x, weight, kernel_size=3):
    """x: (B, C, H, W); weight: (1, 2, K, K) conv weight (no bias)."""
    B, C, H, W = x.shape
    K = kernel_size
    assert K % 2 == 1, "kernel_size must be odd (PyTorch SAME padding = K//2)"
    p = K // 2
    HW = H * W

    # Sublane bands for the finalize conv (a band must hold >= p rows).
    NB = 1
    for nb in (8, 4, 2):
        if H % nb == 0 and H // nb >= p:
            NB = nb
            break
    BW = HW // NB
    HALO = p * W
    PVb = _round_up(p * W + p, 128)
    pad_len = 2 * PVb + BW

    # Generation-aware channel tile: ~1/8 of physical VMEM for the f32 chunk.
    try:
        vmem_cap = int(pltpu.get_tpu_info().vmem_capacity_bytes)
    except Exception:
        vmem_cap = 64 * 1024 * 1024
    budget = max(4 * 1024 * 1024, vmem_cap // 8)
    CT = _pick_c_tile(C, HW, budget)
    nc = pl.cdiv(C, CT)
    ragged = (nc * CT != C)

    x_flat = x.reshape(B, C, HW)                                 # free (contiguous)
    w_flat = weight.reshape(2 * K * K).astype(jnp.float32)

    kernel = functools.partial(
        _spatial_attention_kernel, C=C, CT=CT, W=W, K=K, HW=HW,
        NB=NB, BW=BW, HALO=HALO, PVb=PVb, ragged=ragged)

    # Sized VMEM limit: double-buffered x/out blocks + scratch + f32 chunk
    # intermediates + headroom — never the whole physical VMEM.
    itemsize = jnp.dtype(x.dtype).itemsize
    x_blk = CT * HW * itemsize
    x_blk_f32 = CT * HW * 4
    out_blk = NB * BW * itemsize
    scratch = 2 * 8 * HW * 4 + 2 * NB * pad_len * 4
    vmem_limit = 2 * x_blk + 2 * out_blk + scratch + 2 * x_blk_f32 + 16 * 1024 * 1024
    vmem_limit = max(32 * 1024 * 1024, min(vmem_limit, vmem_cap - 8 * 1024 * 1024))

    out = pl.pallas_call(
        kernel,
        out_shape=jax.ShapeDtypeStruct((B, NB, BW), x.dtype),
        grid_spec=pltpu.PrefetchScalarGridSpec(
            num_scalar_prefetch=0,
            grid=(B, nc),
            in_specs=[
                pl.BlockSpec(memory_space=pltpu.MemorySpace.SMEM),   # weights
                # NOTE: add pipeline_mode=pl.Buffered(3) here if a profile shows
                # DMA gaps at step boundaries on 128 MiB-VMEM parts (v5e/v6e).
                pl.BlockSpec((1, CT, HW), lambda b, c: (b, c, 0)),   # x chunk
            ],
            out_specs=pl.BlockSpec((1, NB, BW), lambda b, c: (b, 0, 0)),
            scratch_shapes=[
                pltpu.VMEM((8, HW), jnp.float32),        # channel-group sums
                pltpu.VMEM((8, HW), jnp.float32),        # channel-group maxes
                pltpu.VMEM((NB, pad_len), jnp.float32),  # padded banded avg map
                pltpu.VMEM((NB, pad_len), jnp.float32),  # padded banded max map
            ],
        ),
        compiler_params=pltpu.CompilerParams(
            dimension_semantics=("parallel", "arbitrary"),
            vmem_limit_bytes=int(vmem_limit),
        ),
    )(w_flat, x_flat)
    # TODO(synk): for B == 1 on v7x (2 TensorCores), add a second 'parallel'
    # grid axis over spatial tiles of HW (the channel reduce needs no halo;
    # only the finalize conv needs a K//2-row halo) so both cores stay busy.
    return out.reshape(B, 1, H, W)


def _reference(x, weight):
    # Pure-JAX reference of the PyTorch forward.
    avg = jnp.mean(x, axis=1, keepdims=True)
    mx = jnp.max(x, axis=1, keepdims=True)
    cat = jnp.concatenate([avg, mx], axis=1)                     # (B,2,H,W)
    y = jax.lax.conv_general_dilated(
        cat, weight, window_strides=(1, 1), padding="SAME",
        dimension_numbers=("NCHW", "OIHW", "NCHW"))
    return jax.nn.sigmoid(y)


if __name__ == "__main__":
    key = jax.random.PRNGKey(0)
    kx, kw = jax.random.split(key)

    B, C, H, W = 2, 4, 16, 16
    K = 3

    x = jax.random.normal(kx, (B, C, H, W), dtype=jnp.float32)
    # Deterministic conv weight init (shape matches nn.Conv2d(2, 1, 3, bias=False)).
    fan_in = 2 * K * K
    bound = 1.0 / float(fan_in) ** 0.5
    weight = jax.random.uniform(kw, (1, 2, K, K), jnp.float32, -bound, bound)

    out = spatial_attention(x, weight, kernel_size=K)
    out = jax.block_until_ready(out)

    ref = _reference(x, weight)
    assert out.shape == (B, 1, H, W)
    assert jnp.allclose(out, ref, atol=1e-5, rtol=1e-5), "mismatch vs reference"

    print("KERNEL_OK")
</pallas_src>

<mosaic_0001>
module attributes {stable_mosaic.version = 11 : i64} {
  func.func @_spatial_attention_kernel(%arg0: i32, %arg1: i32, %arg2: memref<18xf32, #tpu.memory_space<smem>>, %arg3: memref<1x8x256xf32, #tpu.memory_space<vmem>>, %arg4: memref<1x8x32xf32, #tpu.memory_space<vmem>>, %arg5: memref<8x256xf32, #tpu.memory_space<vmem>>, %arg6: memref<8x256xf32, #tpu.memory_space<vmem>>, %arg7: memref<8x288xf32, #tpu.memory_space<vmem>>, %arg8: memref<8x288xf32, #tpu.memory_space<vmem>>) attributes {dimension_semantics = [#tpu.dimension_semantics<parallel>, #tpu.dimension_semantics<arbitrary>], iteration_bounds = array<i64: 2, 1>, scalar_prefetch = 0 : i64, scratch_operands = 4 : i64, tpu.core_type = #tpu.core_type<tc>, window_params = [{transform_indices = @transform_0, window_bounds = array<i64: 18>}, {transform_indices = @transform_1, window_bounds = array<i64: 1, 8, 256>}, {transform_indices = @transform_2, window_bounds = array<i64: 1, 8, 32>}]} {
    %c0 = arith.constant 0 : index
    %c0_0 = arith.constant 0 : index
    %c0_1 = arith.constant 0 : index
    %0 = vector.load %arg3[%c0, %c0_0, %c0_1] : memref<1x8x256xf32, #tpu.memory_space<vmem>>, vector<1x8x256xf32>
    %1 = vector.shape_cast %0 : vector<1x8x256xf32> to vector<8x256xf32>
    %2 = tpu.iota {dimensions = array<i32: 0>} : vector<8x1xi32>
    %c8_i32 = arith.constant 8 : i32
    %3 = arith.muli %arg1, %c8_i32 : i32
    %4 = vector.broadcast %3 : i32 to vector<8x1xi32>
    %5 = arith.addi %2, %4 : vector<8x1xi32>
    %c4_i32 = arith.constant 4 : i32
    %6 = vector.broadcast %c4_i32 : i32 to vector<8x1xi32>
    %7 = arith.cmpi slt, %5, %6 : vector<8x1xi32>
    %cst = arith.constant 0.000000e+00 : f32
    %8 = vector.shape_cast %7 : vector<8x1xi1> to vector<8x1xi1>
    %9 = vector.broadcast %8 : vector<8x1xi1> to vector<8x256xi1>
    %10 = vector.broadcast %cst : f32 to vector<8x256xf32>
    %11 = arith.select %9, %1, %10 : vector<8x256xi1>, vector<8x256xf32>
    %cst_2 = arith.constant 0xFF800000 : f32
    %12 = vector.shape_cast %7 : vector<8x1xi1> to vector<8x1xi1>
    %13 = vector.broadcast %12 : vector<8x1xi1> to vector<8x256xi1>
    %14 = vector.broadcast %cst_2 : f32 to vector<8x256xf32>
    %15 = arith.select %13, %1, %14 : vector<8x256xi1>, vector<8x256xf32>
    %16 = vector.shape_cast %11 : vector<8x256xf32> to vector<1x8x256xf32>
    %cst_3 = arith.constant dense<0.000000e+00> : vector<8x256xf32>
    %17 = vector.multi_reduction <add>, %16, %cst_3 [0] : vector<1x8x256xf32> to vector<8x256xf32>
    %18 = vector.shape_cast %15 : vector<8x256xf32> to vector<1x8x256xf32>
    %cst_4 = arith.constant dense<0xFF800000> : vector<8x256xf32>
    %19 = vector.multi_reduction <maximumf>, %18, %cst_4 [0] : vector<1x8x256xf32> to vector<8x256xf32>
    %c0_i32 = arith.constant 0 : i32
    %20 = arith.cmpi eq, %arg1, %c0_i32 : i32
    %21 = arith.extui %20 : i1 to i32
    %c0_i32_5 = arith.constant 0 : i32
    %22 = arith.cmpi ne, %21, %c0_i32_5 : i32
    scf.if %22 {
      %c0_10 = arith.constant 0 : index
      %c0_11 = arith.constant 0 : index
      %29 = vector.load %arg5[%c0_10, %c0_11] : memref<8x256xf32, #tpu.memory_space<vmem>>, vector<8x256xf32>
      tpu.vector_store %arg5[%c0_10, %c0_11], %17 {strides = array<i32>} : memref<8x256xf32, #tpu.memory_space<vmem>>, vector<8x256xf32>,
      %c0_12 = arith.constant 0 : index
      %c0_13 = arith.constant 0 : index
      %30 = vector.load %arg6[%c0_12, %c0_13] : memref<8x256xf32, #tpu.memory_space<vmem>>, vector<8x256xf32>
      tpu.vector_store %arg6[%c0_12, %c0_13], %19 {strides = array<i32>} : memref<8x256xf32, #tpu.memory_space<vmem>>, vector<8x256xf32>,
    } else {
    }
    %c0_i32_6 = arith.constant 0 : i32
    %23 = arith.cmpi sgt, %arg1, %c0_i32_6 : i32
    %24 = arith.extui %23 : i1 to i32
    %c0_i32_7 = arith.constant 0 : i32
    %25 = arith.cmpi ne, %24, %c0_i32_7 : i32
    scf.if %25 {
      %c0_10 = arith.constant 0 : index
      %c0_11 = arith.constant 0 : index
      %29 = vector.load %arg5[%c0_10, %c0_11] : memref<8x256xf32, #tpu.memory_space<vmem>>, vector<8x256xf32>
      %30 = arith.addf %29, %17 : vector<8x256xf32>
      %c0_12 = arith.constant 0 : index
      %c0_13 = arith.constant 0 : index
      %31 = vector.load %arg5[%c0_12, %c0_13] : memref<8x256xf32, #tpu.memory_space<vmem>>, vector<8x256xf32>
      tpu.vector_store %arg5[%c0_12, %c0_13], %30 {strides = array<i32>} : memref<8x256xf32, #tpu.memory_space<vmem>>, vector<8x256xf32>,
      %c0_14 = arith.constant 0 : index
      %c0_15 = arith.constant 0 : index
      %32 = vector.load %arg6[%c0_14, %c0_15] : memref<8x256xf32, #tpu.memory_space<vmem>>, vector<8x256xf32>
      %33 = arith.maximumf %32, %19 : vector<8x256xf32>
      %c0_16 = arith.constant 0 : index
      %c0_17 = arith.constant 0 : index
      %34 = vector.load %arg6[%c0_16, %c0_17] : memref<8x256xf32, #tpu.memory_space<vmem>>, vector<8x256xf32>
      tpu.vector_store %arg6[%c0_16, %c0_17], %33 {strides = array<i32>} : memref<8x256xf32, #tpu.memory_space<vmem>>, vector<8x256xf32>,
    } else {
    }
    %c0_i32_8 = arith.constant 0 : i32
    %26 = arith.cmpi eq, %arg1, %c0_i32_8 : i32
    %27 = arith.extui %26 : i1 to i32
    %c0_i32_9 = arith.constant 0 : i32
    %28 = arith.cmpi ne, %27, %c0_i32_9 : i32
    scf.if %28 {
      %c0_10 = arith.constant 0 : index
      %c0_11 = arith.constant 0 : index
      %29 = vector.load %arg5[%c0_10, %c0_11] : memref<8x256xf32, #tpu.memory_space<vmem>>, vector<8x256xf32>
      %cst_12 = arith.constant dense<0.000000e+00> : vector<256xf32>
      %30 = vector.multi_reduction <add>, %29, %cst_12 [0] : vector<8x256xf32> to vector<256xf32>
      %31 = vector.shape_cast %30 : vector<256xf32> to vector<1x256xf32>
      %cst_13 = arith.constant 2.500000e-01 : f32
      %32 = vector.broadcast %cst_13 : f32 to vector<1x256xf32>
      %33 = arith.mulf %31, %32 : vector<1x256xf32>
      %c0_14 = arith.constant 0 : index
      %c0_15 = arith.constant 0 : index
      %34 = vector.load %arg6[%c0_14, %c0_15] : memref<8x256xf32, #tpu.memory_space<vmem>>, vector<8x256xf32>
      %cst_16 = arith.constant dense<0xFF800000> : vector<256xf32>
      %35 = vector.multi_reduction <maximumf>, %34, %cst_16 [0] : vector<8x256xf32> to vector<256xf32>
      %36 = vector.shape_cast %35 : vector<256xf32> to vector<1x256xf32>
      %cst_17 = arith.constant 0.000000e+00 : f32
      %37 = vector.broadcast %cst_17 : f32 to vector<8x288xf32>
      %c0_18 = arith.constant 0 : index
      %c0_19 = arith.constant 0 : index
      %38 = vector.load %arg7[%c0_18, %c0_19] : memref<8x288xf32, #tpu.memory_space<vmem>>, vector<8x288xf32>
      tpu.vector_store %arg7[%c0_18, %c0_19], %37 {strides = array<i32>} : memref<8x288xf32, #tpu.memory_space<vmem>>, vector<8x288xf32>,
      %cst_20 = arith.constant 0.000000e+00 : f32
      %39 = vector.broadcast %cst_20 : f32 to vector<8x288xf32>
      %c0_21 = arith.constant 0 : index
      %c0_22 = arith.constant 0 : index
      %40 = vector.load %arg8[%c0_21, %c0_22] : memref<8x288xf32, #tpu.memory_space<vmem>>, vector<8x288xf32>
      tpu.vector_store %arg8[%c0_21, %c0_22], %39 {strides = array<i32>} : memref<8x288xf32, #tpu.memory_space<vmem>>, vector<8x288xf32>,
      %41 = vector.extract_strided_slice %33 {offsets = [0, 0], sizes = [1, 32], strides = [1, 1]} : vector<1x256xf32> to vector<1x32xf32>
      %c0_23 = arith.constant 0 : index
      %c128 = arith.constant 128 : index
      %42 = vector.load %arg7[%c0_23, %c128] : memref<8x288xf32, #tpu.memory_space<vmem>>, vector<1x32xf32>
      tpu.vector_store %arg7[%c0_23, %c128], %41 {strides = array<i32>} : memref<8x288xf32, #tpu.memory_space<vmem>>, vector<1x32xf32>,
      %43 = vector.extract_strided_slice %36 {offsets = [0, 0], sizes = [1, 32], strides = [1, 1]} : vector<1x256xf32> to vector<1x32xf32>
      %c0_24 = arith.constant 0 : index
      %c128_25 = arith.constant 128 : index
      %44 = vector.load %arg8[%c0_24, %c128_25] : memref<8x288xf32, #tpu.memory_space<vmem>>, vector<1x32xf32>
      tpu.vector_store %arg8[%c0_24, %c128_25], %43 {strides = array<i32>} : memref<8x288xf32, #tpu.memory_space<vmem>>, vector<1x32xf32>,
      %45 = vector.extract_strided_slice %33 {offsets = [0, 32], sizes = [1, 16], strides = [1, 1]} : vector<1x256xf32> to vector<1x16xf32>
      %c0_26 = arith.constant 0 : index
      %c160 = arith.constant 160 : index
      %46 = vector.load %arg7[%c0_26, %c160] : memref<8x288xf32, #tpu.memory_space<vmem>>, vector<1x16xf32>
      tpu.vector_store %arg7[%c0_26, %c160], %45 {strides = array<i32>} : memref<8x288xf32, #tpu.memory_space<vmem>>, vector<1x16xf32>,
      %47 = vector.extract_strided_slice %36 {offsets = [0, 32], sizes = [1, 16], strides = [1, 1]} : vector<1x256xf32> to vector<1x16xf32>
      %c0_27 = arith.constant 0 : index
      %c160_28 = arith.constant 160 : index
      %48 = vector.load %arg8[%c0_27, %c160_28] : memref<8x288xf32, #tpu.memory_space<vmem>>, vector<1x16xf32>
      tpu.vector_store %arg8[%c0_27, %c160_28], %47 {strides = array<i32>} : memref<8x288xf32, #tpu.memory_space<vmem>>, vector<1x16xf32>,
      %49 = vector.extract_strided_slice %33 {offsets = [0, 32], sizes = [1, 32], strides = [1, 1]} : vector<1x256xf32> to vector<1x32xf32>
      %c1 = arith.constant 1 : index
      %c128_29 = arith.constant 128 : index
      %50 = vector.load %arg7[%c1, %c128_29] : memref<8x288xf32, #tpu.memory_space<vmem>>, vector<1x32xf32>
      tpu.vector_store %arg7[%c1, %c128_29], %49 {strides = array<i32>} : memref<8x288xf32, #tpu.memory_space<vmem>>, vector<1x32xf32>,
      %51 = vector.extract_strided_slice %36 {offsets = [0, 32], sizes = [1, 32], strides = [1, 1]} : vector<1x256xf32> to vector<1x32xf32>
      %c1_30 = arith.constant 1 : index
      %c128_31 = arith.constant 128 : index
      %52 = vector.load %arg8[%c1_30, %c128_31] : memref<8x288xf32, #tpu.memory_space<vmem>>, vector<1x32xf32>
      tpu.vector_store %arg8[%c1_30, %c128_31], %51 {strides = array<i32>} : memref<8x288xf32, #tpu.memory_space<vmem>>, vector<1x32xf32>,
      %53 = vector.extract_strided_slice %33 {offsets = [0, 16], sizes = [1, 16], strides = [1, 1]} : vector<1x256xf32> to vector<1x16xf32>
      %c1_32 = arith.constant 1 : index
      %c112 = arith.constant 112 : index
      %54 = vector.load %arg7[%c1_32, %c112] : memref<8x288xf32, #tpu.memory_space<vmem>>, vector<1x16xf32>
      tpu.vector_store %arg7[%c1_32, %c112], %53 {strides = array<i32>} : memref<8x288xf32, #tpu.memory_space<vmem>>, vector<1x16xf32>,
      %55 = vector.extract_strided_slice %36 {offsets = [0, 16], sizes = [1, 16], strides = [1, 1]} : vector<1x256xf32> to vector<1x16xf32>
      %c1_33 = arith.constant 1 : index
      %c112_34 = arith.constant 112 : index
      %56 = vector.load %arg8[%c1_33, %c112_34] : memref<8x288xf32, #tpu.memory_space<vmem>>, vector<1x16xf32>
      tpu.vector_store %arg8[%c1_33, %c112_34], %55 {strides = array<i32>} : memref<8x288xf32, #tpu.memory_space<vmem>>, vector<1x16xf32>,
      %57 = vector.extract_strided_slice %33 {offsets = [0, 64], sizes = [1, 16], strides = [1, 1]} : vector<1x256xf32> to vector<1x16xf32>
      %c1_35 = arith.constant 1 : index
      %c160_36 = arith.constant 160 : index
      %58 = vector.load %arg7[%c1_35, %c160_36] : memref<8x288xf32, #tpu.memory_space<vmem>>, vector<1x16xf32>
      tpu.vector_store %arg7[%c1_35, %c160_36], %57 {strides = array<i32>} : memref<8x288xf32, #tpu.memory_space<vmem>>, vector<1x16xf32>,
      %59 = vector.extract_strided_slice %36 {offsets = [0, 64], sizes = [1, 16], strides = [1, 1]} : vector<1x256xf32> to vector<1x16xf32>
      %c1_37 = arith.constant 1 : index
      %c160_38 = arith.constant 160 : index
      %60 = vector.load %arg8[%c1_37, %c160_38] : memref<8x288xf32, #tpu.memory_space<vmem>>, vector<1x16xf32>
      tpu.vector_store %arg8[%c1_37, %c160_38], %59 {strides = array<i32>} : memref<8x288xf32, #tpu.memory_space<vmem>>, vector<1x16xf32>,
      %61 = vector.extract_strided_slice %33 {offsets = [0, 64], sizes = [1, 32], strides = [1, 1]} : vector<1x256xf32> to vector<1x32xf32>
      %c2 = arith.constant 2 : index
      %c128_39 = arith.constant 128 : index
      %62 = vector.load %arg7[%c2, %c128_39] : memref<8x288xf32, #tpu.memory_space<vmem>>, vector<1x32xf32>
      tpu.vector_store %arg7[%c2, %c128_39], %61 {strides = array<i32>} : memref<8x288xf32, #tpu.memory_space<vmem>>, vector<1x32xf32>,
      %63 = vector.extract_strided_slice %36 {offsets = [0, 64], sizes = [1, 32], strides = [1, 1]} : vector<1x256xf32> to vector<1x32xf32>
      %c2_40 = arith.constant 2 : index
      %c128_41 = arith.constant 128 : index
      %64 = vector.load %arg8[%c2_40, %c128_41] : memref<8x288xf32, #tpu.memory_space<vmem>>, vector<1x32xf32>
      tpu.vector_store %arg8[%c2_40, %c128_41], %63 {strides = array<i32>} : memref<8x288xf32, #tpu.memory_space<vmem>>, vector<1x32xf32>,
      %65 = vector.extract_strided_slice %33 {offsets = [0, 48], sizes = [1, 16], strides = [1, 1]} : vector<1x256xf32> to vector<1x16xf32>
      %c2_42 = arith.constant 2 : index
      %c112_43 = arith.constant 112 : index
      %66 = vector.load %arg7[%c2_42, %c112_43] : memref<8x288xf32, #tpu.memory_space<vmem>>, vector<1x16xf32>
      tpu.vector_store %arg7[%c2_42, %c112_43], %65 {strides = array<i32>} : memref<8x288xf32, #tpu.memory_space<vmem>>, vector<1x16xf32>,
      %67 = vector.extract_strided_slice %36 {offsets = [0, 48], sizes = [1, 16], strides = [1, 1]} : vector<1x256xf32> to vector<1x16xf32>
      %c2_44 = arith.constant 2 : index
      %c112_45 = arith.constant 112 : index
      %68 = vector.load %arg8[%c2_44, %c112_45] : memref<8x288xf32, #tpu.memory_space<vmem>>, vector<1x16xf32>
      tpu.vector_store %arg8[%c2_44, %c112_45], %67 {strides = array<i32>} : memref<8x288xf32, #tpu.memory_space<vmem>>, vector<1x16xf32>,
      %69 = vector.extract_strided_slice %33 {offsets = [0, 96], sizes = [1, 16], strides = [1, 1]} : vector<1x256xf32> to vector<1x16xf32>
      %c2_46 = arith.constant 2 : index
      %c160_47 = arith.constant 160 : index
      %70 = vector.load %arg7[%c2_46, %c160_47] : memref<8x288xf32, #tpu.memory_space<vmem>>, vector<1x16xf32>
      tpu.vector_store %arg7[%c2_46, %c160_47], %69 {strides = array<i32>} : memref<8x288xf32, #tpu.memory_space<vmem>>, vector<1x16xf32>,
      %71 = vector.extract_strided_slice %36 {offsets = [0, 96], sizes = [1, 16], strides = [1, 1]} : vector<1x256xf32> to vector<1x16xf32>
      %c2_48 = arith.constant 2 : index
      %c160_49 = arith.constant 160 : index
      %72 = vector.load %arg8[%c2_48, %c160_49] : memref<8x288xf32, #tpu.memory_space<vmem>>, vector<1x16xf32>
      tpu.vector_store %arg8[%c2_48, %c160_49], %71 {strides = array<i32>} : memref<8x288xf32, #tpu.memory_space<vmem>>, vector<1x16xf32>,
      %73 = vector.extract_strided_slice %33 {offsets = [0, 96], sizes = [1, 32], strides = [1, 1]} : vector<1x256xf32> to vector<1x32xf32>
      %c3 = arith.constant 3 : index
      %c128_50 = arith.constant 128 : index
      %74 = vector.load %arg7[%c3, %c128_50] : memref<8x288xf32, #tpu.memory_space<vmem>>, vector<1x32xf32>
      tpu.vector_store %arg7[%c3, %c128_50], %73 {strides = array<i32>} : memref<8x288xf32, #tpu.memory_space<vmem>>, vector<1x32xf32>,
      %75 = vector.extract_strided_slice %36 {offsets = [0, 96], sizes = [1, 32], strides = [1, 1]} : vector<1x256xf32> to vector<1x32xf32>
      %c3_51 = arith.constant 3 : index
      %c128_52 = arith.constant 128 : index
      %76 = vector.load %arg8[%c3_51, %c128_52] : memref<8x288xf32, #tpu.memory_space<vmem>>, vector<1x32xf32>
      tpu.vector_store %arg8[%c3_51, %c128_52], %75 {strides = array<i32>} : memref<8x288xf32, #tpu.memory_space<vmem>>, vector<1x32xf32>,
      %77 = vector.extract_strided_slice %33 {offsets = [0, 80], sizes = [1, 16], strides = [1, 1]} : vector<1x256xf32> to vector<1x16xf32>
      %c3_53 = arith.constant 3 : index
      %c112_54 = arith.constant 112 : index
      %78 = vector.load %arg7[%c3_53, %c112_54] : memref<8x288xf32, #tpu.memory_space<vmem>>, vector<1x16xf32>
      tpu.vector_store %arg7[%c3_53, %c112_54], %77 {strides = array<i32>} : memref<8x288xf32, #tpu.memory_space<vmem>>, vector<1x16xf32>,
      %79 = vector.extract_strided_slice %36 {offsets = [0, 80], sizes = [1, 16], strides = [1, 1]} : vector<1x256xf32> to vector<1x16xf32>
      %c3_55 = arith.constant 3 : index
      %c112_56 = arith.constant 112 : index
      %80 = vector.load %arg8[%c3_55, %c112_56] : memref<8x288xf32, #tpu.memory_space<vmem>>, vector<1x16xf32>
      tpu.vector_store %arg8[%c3_55, %c112_56], %79 {strides = array<i32>} : memref<8x288xf32, #tpu.memory_space<vmem>>, vector<1x16xf32>,
      %81 = vector.extract_strided_slice %33 {offsets = [0, 128], sizes = [1, 16], strides = [1, 1]} : vector<1x256xf32> to vector<1x16xf32>
      %c3_57 = arith.constant 3 : index
      %c160_58 = arith.constant 160 : index
      %82 = vector.load %arg7[%c3_57, %c160_58] : memref<8x288xf32, #tpu.memory_space<vmem>>, vector<1x16xf32>
      tpu.vector_store %arg7[%c3_57, %c160_58], %81 {strides = array<i32>} : memref<8x288xf32, #tpu.memory_space<vmem>>, vector<1x16xf32>,
      %83 = vector.extract_strided_slice %36 {offsets = [0, 128], sizes = [1, 16], strides = [1, 1]} : vector<1x256xf32> to vector<1x16xf32>
      %c3_59 = arith.constant 3 : index
      %c160_60 = arith.constant 160 : index
      %84 = vector.load %arg8[%c3_59, %c160_60] : memref<8x288xf32, #tpu.memory_space<vmem>>, vector<1x16xf32>
      tpu.vector_store %arg8[%c3_59, %c160_60], %83 {strides = array<i32>} : memref<8x288xf32, #tpu.memory_space<vmem>>, vector<1x16xf32>,
      %85 = vector.extract_strided_slice %33 {offsets = [0, 128], sizes = [1, 32], strides = [1, 1]} : vector<1x256xf32> to vector<1x32xf32>
      %c4 = arith.constant 4 : index
      %c128_61 = arith.constant 128 : index
      %86 = vector.load %arg7[%c4, %c128_61] : memref<8x288xf32, #tpu.memory_space<vmem>>, vector<1x32xf32>
      tpu.vector_store %arg7[%c4, %c128_61], %85 {strides = array<i32>} : memref<8x288xf32, #tpu.memory_space<vmem>>, vector<1x32xf32>,
      %87 = vector.extract_strided_slice %36 {offsets = [0, 128], sizes = [1, 32], strides = [1, 1]} : vector<1x256xf32> to vector<1x32xf32>
      %c4_62 = arith.constant 4 : index
      %c128_63 = arith.constant 128 : index
      %88 = vector.load %arg8[%c4_62, %c128_63] : memref<8x288xf32, #tpu.memory_space<vmem>>, vector<1x32xf32>
      tpu.vector_store %arg8[%c4_62, %c128_63], %87 {strides = array<i32>} : memref<8x288xf32, #tpu.memory_space<vmem>>, vector<1x32xf32>,
      %89 = vector.extract_strided_slice %33 {offsets = [0, 112], sizes = [1, 16], strides = [1, 1]} : vector<1x256xf32> to vector<1x16xf32>
      %c4_64 = arith.constant 4 : index
      %c112_65 = arith.constant 112 : index
      %90 = vector.load %arg7[%c4_64, %c112_65] : memref<8x288xf32, #tpu.memory_space<vmem>>, vector<1x16xf32>
      tpu.vector_store %arg7[%c4_64, %c112_65], %89 {strides = array<i32>} : memref<8x288xf32, #tpu.memory_space<vmem>>, vector<1x16xf32>,
      %91 = vector.extract_strided_slice %36 {offsets = [0, 112], sizes = [1, 16], strides = [1, 1]} : vector<1x256xf32> to vector<1x16xf32>
      %c4_66 = arith.constant 4 : index
      %c112_67 = arith.constant 112 : index
      %92 = vector.load %arg8[%c4_66, %c112_67] : memref<8x288xf32, #tpu.memory_space<vmem>>, vector<1x16xf32>
      tpu.vector_store %arg8[%c4_66, %c112_67], %91 {strides = array<i32>} : memref<8x288xf32, #tpu.memory_space<vmem>>, vector<1x16xf32>,
      %93 = vector.extract_strided_slice %33 {offsets = [0, 160], sizes = [1, 16], strides = [1, 1]} : vector<1x256xf32> to vector<1x16xf32>
      %c4_68 = arith.constant 4 : index
      %c160_69 = arith.constant 160 : index
      %94 = vector.load %arg7[%c4_68, %c160_69] : memref<8x288xf32, #tpu.memory_space<vmem>>, vector<1x16xf32>
      tpu.vector_store %arg7[%c4_68, %c160_69], %93 {strides = array<i32>} : memref<8x288xf32, #tpu.memory_space<vmem>>, vector<1x16xf32>,
      %95 = vector.extract_strided_slice %36 {offsets = [0, 160], sizes = [1, 16], strides = [1, 1]} : vector<1x256xf32> to vector<1x16xf32>
      %c4_70 = arith.constant 4 : index
      %c160_71 = arith.constant 160 : index
      %96 = vector.load %arg8[%c4_70, %c160_71] : memref<8x288xf32, #tpu.memory_space<vmem>>, vector<1x16xf32>
      tpu.vector_store %arg8[%c4_70, %c160_71], %95 {strides = array<i32>} : memref<8x288xf32, #tpu.memory_space<vmem>>, vector<1x16xf32>,
      %97 = vector.extract_strided_slice %33 {offsets = [0, 160], sizes = [1, 32], strides = [1, 1]} : vector<1x256xf32> to vector<1x32xf32>
      %c5 = arith.constant 5 : index
      %c128_72 = arith.constant 128 : index
      %98 = vector.load %arg7[%c5, %c128_72] : memref<8x288xf32, #tpu.memory_space<vmem>>, vector<1x32xf32>
      tpu.vector_store %arg7[%c5, %c128_72], %97 {strides = array<i32>} : memref<8x288xf32, #tpu.memory_space<vmem>>, vector<1x32xf32>,
      %99 = vector.extract_strided_slice %36 {offsets = [0, 160], sizes = [1, 32], strides = [1, 1]} : vector<1x256xf32> to vector<1x32xf32>
      %c5_73 = arith.constant 5 : index
      %c128_74 = arith.constant 128 : index
      %100 = vector.load %arg8[%c5_73, %c128_74] : memref<8x288xf32, #tpu.memory_space<vmem>>, vector<1x32xf32>
      tpu.vector_store %arg8[%c5_73, %c128_74], %99 {strides = array<i32>} : memref<8x288xf32, #tpu.memory_space<vmem>>, vector<1x32xf32>,
      %101 = vector.extract_strided_slice %33 {offsets = [0, 144], sizes = [1, 16], strides = [1, 1]} : vector<1x256xf32> to vector<1x16xf32>
      %c5_75 = arith.constant 5 : index
      %c112_76 = arith.constant 112 : index
      %102 = vector.load %arg7[%c5_75, %c112_76] : memref<8x288xf32, #tpu.memory_space<vmem>>, vector<1x16xf32>
      tpu.vector_store %arg7[%c5_75, %c112_76], %101 {strides = array<i32>} : memref<8x288xf32, #tpu.memory_space<vmem>>, vector<1x16xf32>,
      %103 = vector.extract_strided_slice %36 {offsets = [0, 144], sizes = [1, 16], strides = [1, 1]} : vector<1x256xf32> to vector<1x16xf32>
      %c5_77 = arith.constant 5 : index
      %c112_78 = arith.constant 112 : index
      %104 = vector.load %arg8[%c5_77, %c112_78] : memref<8x288xf32, #tpu.memory_space<vmem>>, vector<1x16xf32>
      tpu.vector_store %arg8[%c5_77, %c112_78], %103 {strides = array<i32>} : memref<8x288xf32, #tpu.memory_space<vmem>>, vector<1x16xf32>,
      %105 = vector.extract_strided_slice %33 {offsets = [0, 192], sizes = [1, 16], strides = [1, 1]} : vector<1x256xf32> to vector<1x16xf32>
      %c5_79 = arith.constant 5 : index
      %c160_80 = arith.constant 160 : index
      %106 = vector.load %arg7[%c5_79, %c160_80] : memref<8x288xf32, #tpu.memory_space<vmem>>, vector<1x16xf32>
      tpu.vector_store %arg7[%c5_79, %c160_80], %105 {strides = array<i32>} : memref<8x288xf32, #tpu.memory_space<vmem>>, vector<1x16xf32>,
      %107 = vector.extract_strided_slice %36 {offsets = [0, 192], sizes = [1, 16], strides = [1, 1]} : vector<1x256xf32> to vector<1x16xf32>
      %c5_81 = arith.constant 5 : index
      %c160_82 = arith.constant 160 : index
      %108 = vector.load %arg8[%c5_81, %c160_82] : memref<8x288xf32, #tpu.memory_space<vmem>>, vector<1x16xf32>
      tpu.vector_store %arg8[%c5_81, %c160_82], %107 {strides = array<i32>} : memref<8x288xf32, #tpu.memory_space<vmem>>, vector<1x16xf32>,
      %109 = vector.extract_strided_slice %33 {offsets = [0, 192], sizes = [1, 32], strides = [1, 1]} : vector<1x256xf32> to vector<1x32xf32>
      %c6 = arith.constant 6 : index
      %c128_83 = arith.constant 128 : index
      %110 = vector.load %arg7[%c6, %c128_83] : memref<8x288xf32, #tpu.memory_space<vmem>>, vector<1x32xf32>
      tpu.vector_store %arg7[%c6, %c128_83], %109 {strides = array<i32>} : memref<8x288xf32, #tpu.memory_space<vmem>>, vector<1x32xf32>,
      %111 = vector.extract_strided_slice %36 {offsets = [0, 192], sizes = [1, 32], strides = [1, 1]} : vector<1x256xf32> to vector<1x32xf32>
      %c6_84 = arith.constant 6 : index
      %c128_85 = arith.constant 128 : index
      %112 = vector.load %arg8[%c6_84, %c128_85] : memref<8x288xf32, #tpu.memory_space<vmem>>, vector<1x32xf32>
      tpu.vector_store %arg8[%c6_84, %c128_85], %111 {strides = array<i32>} : memref<8x288xf32, #tpu.memory_space<vmem>>, vector<1x32xf32>,
      %113 = vector.extract_strided_slice %33 {offsets = [0, 176], sizes = [1, 16], strides = [1, 1]} : vector<1x256xf32> to vector<1x16xf32>
      %c6_86 = arith.constant 6 : index
      %c112_87 = arith.constant 112 : index
      %114 = vector.load %arg7[%c6_86, %c112_87] : memref<8x288xf32, #tpu.memory_space<vmem>>, vector<1x16xf32>
      tpu.vector_store %arg7[%c6_86, %c112_87], %113 {strides = array<i32>} : memref<8x288xf32, #tpu.memory_space<vmem>>, vector<1x16xf32>,
      %115 = vector.extract_strided_slice %36 {offsets = [0, 176], sizes = [1, 16], strides = [1, 1]} : vector<1x256xf32> to vector<1x16xf32>
      %c6_88 = arith.constant 6 : index
      %c112_89 = arith.constant 112 : index
      %116 = vector.load %arg8[%c6_88, %c112_89] : memref<8x288xf32, #tpu.memory_space<vmem>>, vector<1x16xf32>
      tpu.vector_store %arg8[%c6_88, %c112_89], %115 {strides = array<i32>} : memref<8x288xf32, #tpu.memory_space<vmem>>, vector<1x16xf32>,
      %117 = vector.extract_strided_slice %33 {offsets = [0, 224], sizes = [1, 16], strides = [1, 1]} : vector<1x256xf32> to vector<1x16xf32>
      %c6_90 = arith.constant 6 : index
      %c160_91 = arith.constant 160 : index
      %118 = vector.load %arg7[%c6_90, %c160_91] : memref<8x288xf32, #tpu.memory_space<vmem>>, vector<1x16xf32>
      tpu.vector_store %arg7[%c6_90, %c160_91], %117 {strides = array<i32>} : memref<8x288xf32, #tpu.memory_space<vmem>>, vector<1x16xf32>,
      %119 = vector.extract_strided_slice %36 {offsets = [0, 224], sizes = [1, 16], strides = [1, 1]} : vector<1x256xf32> to vector<1x16xf32>
      %c6_92 = arith.constant 6 : index
      %c160_93 = arith.constant 160 : index
      %120 = vector.load %arg8[%c6_92, %c160_93] : memref<8x288xf32, #tpu.memory_space<vmem>>, vector<1x16xf32>
      tpu.vector_store %arg8[%c6_92, %c160_93], %119 {strides = array<i32>} : memref<8x288xf32, #tpu.memory_space<vmem>>, vector<1x16xf32>,
      %121 = vector.extract_strided_slice %33 {offsets = [0, 224], sizes = [1, 32], strides = [1, 1]} : vector<1x256xf32> to vector<1x32xf32>
      %c7 = arith.constant 7 : index
      %c128_94 = arith.constant 128 : index
      %122 = vector.load %arg7[%c7, %c128_94] : memref<8x288xf32, #tpu.memory_space<vmem>>, vector<1x32xf32>
      tpu.vector_store %arg7[%c7, %c128_94], %121 {strides = array<i32>} : memref<8x288xf32, #tpu.memory_space<vmem>>, vector<1x32xf32>,
      %123 = vector.extract_strided_slice %36 {offsets = [0, 224], sizes = [1, 32], strides = [1, 1]} : vector<1x256xf32> to vector<1x32xf32>
      %c7_95 = arith.constant 7 : index
      %c128_96 = arith.constant 128 : index
      %124 = vector.load %arg8[%c7_95, %c128_96] : memref<8x288xf32, #tpu.memory_space<vmem>>, vector<1x32xf32>
      tpu.vector_store %arg8[%c7_95, %c128_96], %123 {strides = array<i32>} : memref<8x288xf32, #tpu.memory_space<vmem>>, vector<1x32xf32>,
      %125 = vector.extract_strided_slice %33 {offsets = [0, 208], sizes = [1, 16], strides = [1, 1]} : vector<1x256xf32> to vector<1x16xf32>
      %c7_97 = arith.constant 7 : index
      %c112_98 = arith.constant 112 : index
      %126 = vector.load %arg7[%c7_97, %c112_98] : memref<8x288xf32, #tpu.memory_space<vmem>>, vector<1x16xf32>
      tpu.vector_store %arg7[%c7_97, %c112_98], %125 {strides = array<i32>} : memref<8x288xf32, #tpu.memory_space<vmem>>, vector<1x16xf32>,
      %127 = vector.extract_strided_slice %36 {offsets = [0, 208], sizes = [1, 16], strides = [1, 1]} : vector<1x256xf32> to vector<1x16xf32>
      %c7_99 = arith.constant 7 : index
      %c112_100 = arith.constant 112 : index
      %128 = vector.load %arg8[%c7_99, %c112_100] : memref<8x288xf32, #tpu.memory_space<vmem>>, vector<1x16xf32>
      tpu.vector_store %arg8[%c7_99, %c112_100], %127 {strides = array<i32>} : memref<8x288xf32, #tpu.memory_space<vmem>>, vector<1x16xf32>,
      %129 = tpu.iota {dimensions = array<i32: 1>} : vector<8x32xi32>
      %c16_i32 = arith.constant 16 : i32
      %c0_i32_101 = arith.constant 0 : i32
      %130 = arith.cmpi eq, %c16_i32, %c0_i32_101 : i32
      %c1_i32 = arith.constant 1 : i32
      %131 = arith.select %130, %c1_i32, %c16_i32 : i32
      %132 = vector.broadcast %131 : i32 to vector<8x32xi32>
      %133 = arith.remsi %129, %132 : vector<8x32xi32>
      %c0_i32_102 = arith.constant 0 : i32
      %134 = vector.broadcast %c0_i32_102 : i32 to vector<8x32xi32>
      %135 = arith.cmpi ne, %133, %134 : vector<8x32xi32>
      %c0_i32_103 = arith.constant 0 : i32
      %136 = vector.broadcast %c0_i32_103 : i32 to vector<8x32xi32>
      %137 = arith.cmpi slt, %133, %136 : vector<8x32xi32>
      %c0_i32_104 = arith.constant 0 : i32
      %138 = arith.cmpi slt, %131, %c0_i32_104 : i32
      %139 = vector.broadcast %138 : i1 to vector<8x32xi1>
      %140 = vector.broadcast %139 : vector<8x32xi1> to vector<8x32xi1>
      %141 = arith.xori %137, %140 : vector<8x32xi1>
      %142 = arith.andi %141, %135 : vector<8x32xi1>
      %143 = vector.broadcast %131 : i32 to vector<8x32xi32>
      %144 = arith.addi %133, %143 : vector<8x32xi32>
      %145 = arith.select %142, %144, %133 : vector<8x32xi1>, vector<8x32xi32>
      %cst_105 = arith.constant 0.000000e+00 : f32
      %146 = vector.broadcast %cst_105 : f32 to vector<8x32xf32>
      %cst_106 = arith.constant 0.000000e+00 : f32
      %147 = vector.broadcast %cst_106 : f32 to vector<8x32xf32>
      %c0_107 = arith.constant 0 : index
      %148 = memref.load %arg2[%c0_107] : memref<18xf32, #tpu.memory_space<smem>>
      %c0_108 = arith.constant 0 : index
      %c111 = arith.constant 111 : index
      %149 = vector.load %arg7[%c0_108, %c111] : memref<8x288xf32, #tpu.memory_space<vmem>>, vector<8x32xf32>
      %150 = vector.broadcast %148 : f32 to vector<8x32xf32>
      %151 = arith.mulf %150, %149 : vector<8x32xf32>
      %152 = arith.addf %147, %151 : vector<8x32xf32>
      %c9 = arith.constant 9 : index
      %153 = memref.load %arg2[%c9] : memref<18xf32, #tpu.memory_space<smem>>
      %c0_109 = arith.constant 0 : index
      %c111_110 = arith.constant 111 : index
      %154 = vector.load %arg8[%c0_109, %c111_110] : memref<8x288xf32, #tpu.memory_space<vmem>>, vector<8x32xf32>
      %155 = vector.broadcast %153 : f32 to vector<8x32xf32>
      %156 = arith.mulf %155, %154 : vector<8x32xf32>
      %157 = arith.addf %152, %156 : vector<8x32xf32>
      %c3_111 = arith.constant 3 : index
      %158 = memref.load %arg2[%c3_111] : memref<18xf32, #tpu.memory_space<smem>>
      %c0_112 = arith.constant 0 : index
      %c127 = arith.constant 127 : index
      %159 = vector.load %arg7[%c0_112, %c127] : memref<8x288xf32, #tpu.memory_space<vmem>>, vector<8x32xf32>
      %160 = vector.broadcast %158 : f32 to vector<8x32xf32>
      %161 = arith.mulf %160, %159 : vector<8x32xf32>
      %162 = arith.addf %157, %161 : vector<8x32xf32>
      %c12 = arith.constant 12 : index
      %163 = memref.load %arg2[%c12] : memref<18xf32, #tpu.memory_space<smem>>
      %c0_113 = arith.constant 0 : index
      %c127_114 = arith.constant 127 : index
      %164 = vector.load %arg8[%c0_113, %c127_114] : memref<8x288xf32, #tpu.memory_space<vmem>>, vector<8x32xf32>
      %165 = vector.broadcast %163 : f32 to vector<8x32xf32>
      %166 = arith.mulf %165, %164 : vector<8x32xf32>
      %167 = arith.addf %162, %166 : vector<8x32xf32>
      %c6_115 = arith.constant 6 : index
      %168 = memref.load %arg2[%c6_115] : memref<18xf32, #tpu.memory_space<smem>>
      %c0_116 = arith.constant 0 : index
      %c143 = arith.constant 143 : index
      %169 = vector.load %arg7[%c0_116, %c143] : memref<8x288xf32, #tpu.memory_space<vmem>>, vector<8x32xf32>
      %170 = vector.broadcast %168 : f32 to vector<8x32xf32>
      %171 = arith.mulf %170, %169 : vector<8x32xf32>
      %172 = arith.addf %167, %171 : vector<8x32xf32>
      %c15 = arith.constant 15 : index
      %173 = memref.load %arg2[%c15] : memref<18xf32, #tpu.memory_space<smem>>
      %c0_117 = arith.constant 0 : index
      %c143_118 = arith.constant 143 : index
      %174 = vector.load %arg8[%c0_117, %c143_118] : memref<8x288xf32, #tpu.memory_space<vmem>>, vector<8x32xf32>
      %175 = vector.broadcast %173 : f32 to vector<8x32xf32>
      %176 = arith.mulf %175, %174 : vector<8x32xf32>
      %177 = arith.addf %172, %176 : vector<8x32xf32>
      %c1_i32_119 = arith.constant 1 : i32
      %178 = vector.broadcast %c1_i32_119 : i32 to vector<8x32xi32>
      %179 = arith.cmpi sge, %145, %178 : vector<8x32xi32>
      %c17_i32 = arith.constant 17 : i32
      %180 = vector.broadcast %c17_i32 : i32 to vector<8x32xi32>
      %181 = arith.cmpi slt, %145, %180 : vector<8x32xi32>
      %182 = arith.andi %179, %181 : vector<8x32xi1>
      %cst_120 = arith.constant 0.000000e+00 : f32
      %183 = vector.broadcast %cst_120 : f32 to vector<8x32xf32>
      %184 = arith.select %182, %177, %183 : vector<8x32xi1>, vector<8x32xf32>
      %185 = arith.addf %146, %184 : vector<8x32xf32>
      %cst_121 = arith.constant 0.000000e+00 : f32
      %186 = vector.broadcast %cst_121 : f32 to vector<8x32xf32>
      %c1_122 = arith.constant 1 : index
      %187 = memref.load %arg2[%c1_122] : memref<18xf32, #tpu.memory_space<smem>>
      %c0_123 = arith.constant 0 : index
      %c112_124 = arith.constant 112 : index
      %188 = vector.load %arg7[%c0_123, %c112_124] : memref<8x288xf32, #tpu.memory_space<vmem>>, vector<8x32xf32>
      %189 = vector.broadcast %187 : f32 to vector<8x32xf32>
      %190 = arith.mulf %189, %188 : vector<8x32xf32>
      %191 = arith.addf %186, %190 : vector<8x32xf32>
      %c10 = arith.constant 10 : index
      %192 = memref.load %arg2[%c10] : memref<18xf32, #tpu.memory_space<smem>>
      %c0_125 = arith.constant 0 : index
      %c112_126 = arith.constant 112 : index
      %193 = vector.load %arg8[%c0_125, %c112_126] : memref<8x288xf32, #tpu.memory_space<vmem>>, vector<8x32xf32>
      %194 = vector.broadcast %192 : f32 to vector<8x32xf32>
      %195 = arith.mulf %194, %193 : vector<8x32xf32>
      %196 = arith.addf %191, %195 : vector<8x32xf32>
      %c4_127 = arith.constant 4 : index
      %197 = memref.load %arg2[%c4_127] : memref<18xf32, #tpu.memory_space<smem>>
      %c0_128 = arith.constant 0 : index
      %c128_129 = arith.constant 128 : index
      %198 = vector.load %arg7[%c0_128, %c128_129] : memref<8x288xf32, #tpu.memory_space<vmem>>, vector<8x32xf32>
      %199 = vector.broadcast %197 : f32 to vector<8x32xf32>
      %200 = arith.mulf %199, %198 : vector<8x32xf32>
      %201 = arith.addf %196, %200 : vector<8x32xf32>
      %c13 = arith.constant 13 : index
      %202 = memref.load %arg2[%c13] : memref<18xf32, #tpu.memory_space<smem>>
      %c0_130 = arith.constant 0 : index
      %c128_131 = arith.constant 128 : index
      %203 = vector.load %arg8[%c0_130, %c128_131] : memref<8x288xf32, #tpu.memory_space<vmem>>, vector<8x32xf32>
      %204 = vector.broadcast %202 : f32 to vector<8x32xf32>
      %205 = arith.mulf %204, %203 : vector<8x32xf32>
      %206 = arith.addf %201, %205 : vector<8x32xf32>
      %c7_132 = arith.constant 7 : index
      %207 = memref.load %arg2[%c7_132] : memref<18xf32, #tpu.memory_space<smem>>
      %c0_133 = arith.constant 0 : index
      %c144 = arith.constant 144 : index
      %208 = vector.load %arg7[%c0_133, %c144] : memref<8x288xf32, #tpu.memory_space<vmem>>, vector<8x32xf32>
      %209 = vector.broadcast %207 : f32 to vector<8x32xf32>
      %210 = arith.mulf %209, %208 : vector<8x32xf32>
      %211 = arith.addf %206, %210 : vector<8x32xf32>
      %c16 = arith.constant 16 : index
      %212 = memref.load %arg2[%c16] : memref<18xf32, #tpu.memory_space<smem>>
      %c0_134 = arith.constant 0 : index
      %c144_135 = arith.constant 144 : index
      %213 = vector.load %arg8[%c0_134, %c144_135] : memref<8x288xf32, #tpu.memory_space<vmem>>, vector<8x32xf32>
      %214 = vector.broadcast %212 : f32 to vector<8x32xf32>
      %215 = arith.mulf %214, %213 : vector<8x32xf32>
      %216 = arith.addf %211, %215 : vector<8x32xf32>
      %217 = arith.addf %185, %216 : vector<8x32xf32>
      %cst_136 = arith.constant 0.000000e+00 : f32
      %218 = vector.broadcast %cst_136 : f32 to vector<8x32xf32>
      %c2_137 = arith.constant 2 : index
      %219 = memref.load %arg2[%c2_137] : memref<18xf32, #tpu.memory_space<smem>>
      %c0_138 = arith.constant 0 : index
      %c113 = arith.constant 113 : index
      %220 = vector.load %arg7[%c0_138, %c113] : memref<8x288xf32, #tpu.memory_space<vmem>>, vector<8x32xf32>
      %221 = vector.broadcast %219 : f32 to vector<8x32xf32>
      %222 = arith.mulf %221, %220 : vector<8x32xf32>
      %223 = arith.addf %218, %222 : vector<8x32xf32>
      %c11 = arith.constant 11 : index
      %224 = memref.load %arg2[%c11] : memref<18xf32, #tpu.memory_space<smem>>
      %c0_139 = arith.constant 0 : index
      %c113_140 = arith.constant 113 : index
      %225 = vector.load %arg8[%c0_139, %c113_140] : memref<8x288xf32, #tpu.memory_space<vmem>>, vector<8x32xf32>
      %226 = vector.broadcast %224 : f32 to vector<8x32xf32>
      %227 = arith.mulf %226, %225 : vector<8x32xf32>
      %228 = arith.addf %223, %227 : vector<8x32xf32>
      %c5_141 = arith.constant 5 : index
      %229 = memref.load %arg2[%c5_141] : memref<18xf32, #tpu.memory_space<smem>>
      %c0_142 = arith.constant 0 : index
      %c129 = arith.constant 129 : index
      %230 = vector.load %arg7[%c0_142, %c129] : memref<8x288xf32, #tpu.memory_space<vmem>>, vector<8x32xf32>
      %231 = vector.broadcast %229 : f32 to vector<8x32xf32>
      %232 = arith.mulf %231, %230 : vector<8x32xf32>
      %233 = arith.addf %228, %232 : vector<8x32xf32>
      %c14 = arith.constant 14 : index
      %234 = memref.load %arg2[%c14] : memref<18xf32, #tpu.memory_space<smem>>
      %c0_143 = arith.constant 0 : index
      %c129_144 = arith.constant 129 : index
      %235 = vector.load %arg8[%c0_143, %c129_144] : memref<8x288xf32, #tpu.memory_space<vmem>>, vector<8x32xf32>
      %236 = vector.broadcast %234 : f32 to vector<8x32xf32>
      %237 = arith.mulf %236, %235 : vector<8x32xf32>
      %238 = arith.addf %233, %237 : vector<8x32xf32>
      %c8 = arith.constant 8 : index
      %239 = memref.load %arg2[%c8] : memref<18xf32, #tpu.memory_space<smem>>
      %c0_145 = arith.constant 0 : index
      %c145 = arith.constant 145 : index
      %240 = vector.load %arg7[%c0_145, %c145] : memref<8x288xf32, #tpu.memory_space<vmem>>, vector<8x32xf32>
      %241 = vector.broadcast %239 : f32 to vector<8x32xf32>
      %242 = arith.mulf %241, %240 : vector<8x32xf32>
      %243 = arith.addf %238, %242 : vector<8x32xf32>
      %c17 = arith.constant 17 : index
      %244 = memref.load %arg2[%c17] : memref<18xf32, #tpu.memory_space<smem>>
      %c0_146 = arith.constant 0 : index
      %c145_147 = arith.constant 145 : index
      %245 = vector.load %arg8[%c0_146, %c145_147] : memref<8x288xf32, #tpu.memory_space<vmem>>, vector<8x32xf32>
      %246 = vector.broadcast %244 : f32 to vector<8x32xf32>
      %247 = arith.mulf %246, %245 : vector<8x32xf32>
      %248 = arith.addf %243, %247 : vector<8x32xf32>
      %c-1_i32 = arith.constant -1 : i32
      %249 = vector.broadcast %c-1_i32 : i32 to vector<8x32xi32>
      %250 = arith.cmpi sge, %145, %249 : vector<8x32xi32>
      %c15_i32 = arith.constant 15 : i32
      %251 = vector.broadcast %c15_i32 : i32 to vector<8x32xi32>
      %252 = arith.cmpi slt, %145, %251 : vector<8x32xi32>
      %253 = arith.andi %250, %252 : vector<8x32xi1>
      %cst_148 = arith.constant 0.000000e+00 : f32
      %254 = vector.broadcast %cst_148 : f32 to vector<8x32xf32>
      %255 = arith.select %253, %248, %254 : vector<8x32xi1>, vector<8x32xf32>
      %256 = arith.addf %217, %255 : vector<8x32xf32>
      %257 = arith.negf %256 : vector<8x32xf32>
      %258 = math.exp %257 : vector<8x32xf32>
      %cst_149 = arith.constant 1.000000e+00 : f32
      %259 = vector.broadcast %cst_149 : f32 to vector<8x32xf32>
      %260 = arith.addf %259, %258 : vector<8x32xf32>
      %261 = arith.divf %259, %260 : vector<8x32xf32>
      %c0_150 = arith.constant 0 : index
      %c0_151 = arith.constant 0 : index
      %c0_152 = arith.constant 0 : index
      %262 = vector.load %arg4[%c0_150, %c0_151, %c0_152] : memref<1x8x32xf32, #tpu.memory_space<vmem>>, vector<1x8x32xf32>
      %263 = vector.shape_cast %262 : vector<1x8x32xf32> to vector<8x32xf32>
      %264 = vector.shape_cast %261 : vector<8x32xf32> to vector<1x8x32xf32>
      tpu.vector_store %arg4[%c0_150, %c0_151, %c0_152], %264 {strides = array<i32>} : memref<1x8x32xf32, #tpu.memory_space<vmem>>, vector<1x8x32xf32>,
    } else {
    }
    return
  }
  func.func @transform_0(%arg0: i32, %arg1: i32) -> i32 {
    %c0_i32 = arith.constant 0 : i32
    %c0_i32_0 = arith.constant 0 : i32
    return %c0_i32 : i32
  }
  func.func @transform_1(%arg0: i32, %arg1: i32) -> (i32, i32, i32) {
    %c0_i32 = arith.constant 0 : i32
    %c0_i32_0 = arith.constant 0 : i32
    return %arg0, %arg1, %c0_i32 : i32, i32, i32
  }
  func.func @transform_2(%arg0: i32, %arg1: i32) -> (i32, i32, i32) {
    %c0_i32 = arith.constant 0 : i32
    %c0_i32_0 = arith.constant 0 : i32
    %c0_i32_1 = arith.constant 0 : i32
    return %arg0, %c0_i32, %c0_i32_0 : i32, i32, i32
  }
}

</mosaic_0001>

<bundles_post_ra>
// kernel: tpu_custom_call.1
= control target key start
LH: loop header
LB: loop body
LE: loop exit
PB: predicated region body
PF: predicated region fallthrough
CT: control target
= control target key end

     0   :  { %7 = vsyncpa [#allocation9], 0  ;;  %s1270_s0 = inlined_call_operand.hbm [shape: f32[18], index: 0, kind: input, shape index: {}]   ;;  %s1271_s1 = inlined_call_operand.hbm [shape: f32[2,4,256], index: 1, kind: input, shape index: {}]   ;;  %s1272_s2 = inlined_call_operand.hbm [shape: f32[2,8,32], index: 2, kind: output, shape index: {}]  }
   0x1   :  { %8 = vsyncpa [#allocation7], 0 }
   0x2   :  { %10 = vsyncpa [#allocation7 + $0x1], 0 }
   0x3   :  { %11 = vsyncpa [#allocation8], 0 }
   0x4   :  { %13 = vsyncpa [#allocation8 + $0x1], 0  ;;  %s999_s9 = smov 0   ;;  %s1001_s10 = smov 0  }
   0x5   :  { %s1003_s11 = smov 0   ;;  %s1005_s12 = smov 0  }
   0x6   :  { %s1007_s13 = smov 0   ;;  %s1009_s14 = smov 0  }
   0x7 LB: > { %s730_s15 = sadd.s32 4294967295, %s971_s14   ;;  %s731_s16 = sadd.s32 4294967294, %s971_s14   ;;  %s971_s14 = sphi %s1009_s14, %s19_s14   ;;  %s967_s13 = sphi %s1007_s13, %s1283_s13   ;;  %s963_s12 = sphi %s1005_s12, %s1282_s12   ;;  %s959_s11 = sphi %s1003_s11, %s1281_s11   ;;  %s955_s10 = sphi %s1001_s10, %s1280_s10   ;;  %s951_s9 = sphi %s999_s9, %s1279_s9  }
   0x8   : > { %s31_s17 = sadd.s32 1, %s967_s13  ;;  %s61_s18 = sadd.s32 1, %s959_s11 }
   0x9   : > { %p33_p0 = scmp.ge.s32.totalorder %s31_s17, 2  ;;  %p68_p1 = scmp.ne.s32.totalorder %s959_s11, %s955_s10 }
   0xa   : > { %p69_p2 = scmp.eq.s32.totalorder %s971_s14, 0  ;;  %p74_p3 = scmp.ne.s32.totalorder %s955_s10, %s951_s9 }
   0xb   : > { %s1285_s17 = smov (%p33_p0, %s31_s17), 0  ;;  %p1044_p5 = scmp.eq.s32.totalorder %s730_s15, 0 }
   0xc   : > { %p1040_p4 = por %p69_p2, %p68_p1  ;;  %s56_s21 = ssub.s32 %s967_s13, %s1285_s17 }
   0xd   : > { %p98_p6 = scmp.eq.s32.totalorder %s730_s15, 1  ;;  %p59_p7 = scmp.eq.s32.totalorder %s56_s21, 0 }
   0xe   : > { %p1052_p8 = por %p1044_p5, %p74_p3  ;;  %p104_p10 = scmp.eq.s32.totalorder %s731_s16, 1 }
   0xf   : > { %p1056_p9 = por %p98_p6, %p68_p1  ;;  %p732_p12 = scmp.ge.s32.totalorder %s971_s14, 1 }
  0x10   : > { %s1061_s24 = scalar_select %p59_p7, %s959_s11, %s61_s18  }
  0x11   : > { %p1063_p11 = por %p104_p10, %p74_p3  ;;  %p111_p13 = scmp.lt.s32.totalorder %s971_s14, 3 }
  0x12   : > { %s123_s29 = sshll.u32 %s1270_s0, 4  ;;  %s973_s30 = smov [#allocation6]   ;;  %s124_s29 = int_to_ptr.hbm [resolvable:$true] %s123_s29 }
  0x13   : > { %p1069_p0 = pnand %p732_p12, %p111_p13  ;;  %p734_p3 = scmp.ge.s32.totalorder %s971_s14, 2 }
  0x15   : > { %p772_p1 = pneg %p1069_p0  ;;  %130 = sbr.rel (%p734_p3) target bundleno = 35 (0x23), region = 20 }
  0x17   : > { %p773_p2 = pnand %p772_p1, %p1044_p5 }
  0x19   : > { %775 = dma.hbm_to_smem (!%p773_p2), %s124_s29, 16, %s973_s30, [#allocation9]  }
  0x1a   : > { %133 = sbr.rel (!%p1040_p4) target bundleno = 35 (0x23), region = 24  ;;  %s134_s3 = sand.u32 (%p1040_p4), 1, %s959_s11  }
  0x1b   : > { %s735_s4 = sshll.u32 (%p1040_p4), %s134_s3, 4  ;;  %s135_s5 = scalar_lea.sflag (%p1040_p4), [#allocation7], %s134_s3 }
  0x1c   : > { %s138_s6 = scalar_lea.vmem (%p1040_p4), [#allocation10], %s735_s4 }
  0x1f   : > { %145 = vsyncadd %s135_s5, 128  ;;  %s764_s7 = sshll.u32 %s967_s13, 3  ;;  %s155_s8 = sshll.u32 %s138_s6, 4  ;;  %s156_s8 = int_to_ptr.vmem [resolvable:$true] %s155_s8 }
  0x20   : > { %s151_s18 = scalar_lea.hbm %s1271_s1, %s764_s7  ;;  %s974_s27 = smov 128  }
  0x21   : > { %s153_s21 = sshll.u32 %s151_s18, 4  ;;  %s975_s28 = smov 8   ;;  %s154_s21 = int_to_ptr.hbm [resolvable:$true] %s153_s21 }
  0x22   : > { %161 = dma.hbm_to_vmem [thread:$0]  %s154_s21, 128, %s156_s8, %s135_s5, %s974_s27, %s974_s27, %s975_s28  }
  0x23 PF: > { %167 = sbr.rel (%p1069_p0) target bundleno = 517 (0x205), region = 28 }
  0x28   : > { %938 = dma.done.wait (%p1044_p5), [#allocation9], 16  }
  0x29   : > { %940 = vsyncadd (%p1044_p5), [#allocation9], 4294967280  ;;  %s1097_s19 = sand.u32 1, %s955_s10  }
  0x2a   : > { %s740_s29 = sshll.u32 %s1097_s19, 4  ;;  %s175_s30 = scalar_lea.sflag [#allocation7], %s1097_s19 }
  0x2b   : > { %s178_s3 = scalar_lea.vmem [#allocation10], %s740_s29 }
  0x2c   : > { %942 = dma.done.wait (%p1052_p8), %s175_s30, 256  }
  0x2d   : > { %944 = vsyncadd (%p1052_p8), %s175_s30, 4294967040 }
  0x2e   : > { %184 = sfence }
  0x2f   : > { %v205_v0 = vld [vmem:[%s178_s3] sm:$0xff]  ;;  %v206_v1 = vld [vmem:[%s178_s3 + $0x8] sm:$0xff]  ;;  %v207_v2 = vlaneseq  ;;  %v976_v26 = vmov 0.0   ;;  %vm301_vm1 = vcmask 253952   ;;  %s977_s20 = smov 32   ;;  %s978_s22 = smov 96  }
  0x30   : > { %217 = vst [vmem:[#allocation1] ss:$2 sm:$0xff] %v205_v0  ;;  %vm304_vm2 = vcmask 385280   ;;  %s979_s26 = smov 64   ;;  %vm317_vm3 = vcmask 1041280   ;;  %s743_s4 = sld [smem:[#allocation6 + $0x3]] }
  0x31   : > { %219 = vst [vmem:[#allocation1 + $0x1] ss:$2 sm:$0xff] %v206_v1  ;;  %v208_v3 = vshrl.u32 %v207_v2, 7  ;;  %s755_s5 = sld [smem:[#allocation6 + $0x5]]  ;;  %s980_s18 = smov 112   ;;  %vm428_vm4 = vcmask 916480  }
  0x32   : > { %294 = vst [vmem:[#allocation4] sm:$0xff] %v976_v26  ;;  %s1152_s6 = sld [smem:[#allocation6 + $0x7]]  ;;  %vm296_vm5 = vcmask 261120   ;;  %vm476_vm6 = vcmask 138240   ;;  %vm535_vm7 = vcmask 130048   ;;  %vm596_vm9 = vcmask 121856  }
  0x33   : > { %vm212_vm0 = vcmp.lt.s32.totalorder %v208_v3, 4  ;;  %295 = vst [vmem:[#allocation4 + $0x8] sm:$0xff] %v976_v26  ;;  %s1155_s7 = sld [smem:[#allocation6 + $0x4]] }
  0x34   : > { %298 = vst [vmem:[#allocation5] sm:$0xff] %v976_v26  ;;  %s1158_s8 = sld [smem:[#allocation6 + $0x6]] }
  0x35   : > { %299 = vst [vmem:[#allocation5 + $0x8] sm:$0xff] %v976_v26  ;;  %s1163_s15 = sld [smem:[#allocation6 + $0x2]] }
  0x36   : > { %v419_v49 = vstv %s743_s4  ;;  %s1168_s16 = sld [smem:[#allocation6]] }
  0x37   : > { %v552_v50 = vstv %s755_s5  ;;  %s1171_s21 = sld [smem:[#allocation6 + $0xc]] }
  0x38   : > { %v220_v4 = vld.sshfl [vmem:[#allocation1] sm:$0xff pattern:$0x75316420]  ;;  %v221_v5 = vld.sshfl [vmem:[#allocation1 + $0x8] sm:$0xff pattern:$0x75316420]  ;;  %v512_v58 = vstv %s1152_s6 }
  0x39   : > { %v224_v6 = vsel %vm212_vm0, %v220_v4, 0.0  ;;  %v225_v7 = vsel %vm212_vm0, %v221_v5, 0.0  ;;  %226 = vst [vmem:[#allocation1] ss:$2 sm:$0xff] %v205_v0  ;;  %s1175_s27 = sld [smem:[#allocation6 + $0xb]]  ;;  %v494_v59 = vstv %s1155_s7  ;;  %s982_s7 = smov 16  }
  0x3a   : > { %v266_v8 = vrot.slane %v224_v6, 4  ;;  %228 = vst [vmem:[#allocation1 + $0x1] ss:$2 sm:$0xff] %v206_v1  ;;  %v272_v9 = vrot.slane %v225_v7, 4  ;;  %s1178_s28 = sld [smem:[#allocation6 + $0x9]]  ;;  %v450_v5 = vstv %s1158_s8  ;;  %s983_s8 = smov 15  }
  0x3b   : > { %s1182_s29 = sld [smem:[#allocation6 + $0xa]]  ;;  %v540_v62 = vstv %s1163_s15  ;;  %s741_s15 = sshll.u32 %s1097_s19, 3 }
  0x3c   : > { %v267_v10 = vadd.f32 %v266_v8, %v224_v6  ;;  %v273_v11 = vadd.f32 %v272_v9, %v225_v7  ;;  %s1186_s30 = sld [smem:[#allocation6 + $0x1]]  ;;  %v405_v63 = vstv %s1168_s16  ;;  %s761_s16 = sshll.u32 %s963_s12, 3 }
  0x3d   : > { %s1195_s3 = sld [smem:[#allocation6 + $0xe]]  ;;  %v435_v0 = vstv %s1171_s21  ;;  %s622_s12 = scalar_lea.sflag [#allocation8], %s1097_s19 }
  0x3e   : > { %v268_v12 = vrot.slane %v267_v10, 2  ;;  %v274_v13 = vrot.slane %v273_v11, 2  ;;  %s757_s4 = sld [smem:[#allocation6 + $0x8]] }
  0x3f   : > { %v546_v1 = vstv %s1175_s27  ;;  %s752_s5 = sld [smem:[#allocation6 + $0x10]]  ;;  %s632_s27 = scalar_lea.hbm %s1272_s2, %s761_s16 }
  0x40   : > { %v269_v14 = vadd.f32 %v268_v12, %v267_v10  ;;  %v275_v15 = vadd.f32 %v274_v13, %v273_v11  ;;  %v413_v3 = vstv %s1178_s28  ;;  %s758_s6 = sld [smem:[#allocation6 + $0x11]]  ;;  %s200_s28 = scalar_lea.vmem [#allocation11], %s741_s15 }
  0x41   : > { %v229_v16 = vld.sshfl [vmem:[#allocation1] sm:$0xff pattern:$0x75316420]  ;;  %v230_v17 = vld.sshfl [vmem:[#allocation1 + $0x8] sm:$0xff pattern:$0x75316420]  ;;  %v488_v4 = vstv %s1182_s29 }
  0x42   : > { %v270_v18 = vrot.slane %v269_v14, 1  ;;  %v276_v19 = vrot.slane %v275_v15, 1  ;;  %v233_v20 = vsel %vm212_vm0, %v229_v16, -inf  ;;  %v234_v21 = vsel %vm212_vm0, %v230_v17, -inf  ;;  %s634_s29 = sshll.u32 %s200_s28, 4  ;;  %s635_s29 = int_to_ptr.vmem [resolvable:$true] %s634_s29 }
  0x43   : > { %v282_v22 = vrot.slane %v233_v20, 4  ;;  %v288_v23 = vrot.slane %v234_v21, 4  ;;  %v482_v6 = vstv %s1186_s30  ;;  %s636_s30 = sshll.u32 %s632_s27, 4  ;;  %s637_s30 = int_to_ptr.hbm [resolvable:$true] %s636_s30 }
  0x44   : > { %v271_v24 = vadd.f32 %v270_v18, %v269_v14  ;;  %v277_v25 = vadd.f32 %v276_v19, %v275_v15 }
  0x45   : > { %v283_v27 = vmax.f32 %v233_v20, %v282_v22  ;;  %v289_v28 = vmax.f32 %v234_v21, %v288_v23 }
  0x46   : > { %v278_v29 = vmul.f32 0.25, %v271_v24  ;;  %v279_v30 = vmul.f32 0.25, %v277_v25 }
  0x47   : > { %v284_v31 = vrot.slane %v283_v27, 2  ;;  %v290_v32 = vrot.slane %v289_v28, 2 }
  0x48   : > { %334 = vrot.lane.b32.xlu1 %v278_v29, %s977_s20  ;;  %308 = vrot.lane.b32.xlu0 %v278_v29, %s978_s22  ;;  %302 = vst.msk [vmem:[#allocation4 + $0x8] sm:$0x1] %vm301_vm1, %v278_v29 }
  0x49   : > { %v285_v33 = vmax.f32 %v283_v27, %v284_v31  ;;  %372 = vrot.lane.b32.xlu2 %v279_v30, %s979_s26  ;;  %v291_v34 = vmax.f32 %v289_v28, %v290_v32  ;;  %305 = vst.msk [vmem:[#allocation4 + $0x8] sm:$0x1] %vm304_vm2, %v278_v29  ;;  %v561_v28 = vstv %s1195_s3  ;;  %s899_s3 = sshra.s32 %s637_s30, 4  ;;  %s900_s3 = int_to_ptr.hbm [resolvable:$true] %s899_s3 }
  0x4a   : > { %354 = vst.msk [vmem:[#allocation4 + $0xc] sm:$0x1] %vm301_vm1, %v279_v30  ;;  %p906_p7 = scmp.lt.s32.totalorder %s900_s3, %s1272_s2 }
  0x4b   : > { %v286_v35 = vrot.slane %v285_v33, 1  ;;  %v292_v36 = vrot.slane %v291_v34, 1  ;;  %356 = vst.msk [vmem:[#allocation4 + $0x4] sm:$0x1] %vm317_vm3, %v278_v29 }
  0x4c   : > { %358 = vst.msk [vmem:[#allocation4 + $0xc] sm:$0x1] %vm304_vm2, %v279_v30 }
  0x4d   : > { %v287_v37 = vmax.f32 %v285_v33, %v286_v35  ;;  %v293_v38 = vmax.f32 %v291_v34, %v292_v36  ;;  %v570_v36 = vstv %s757_s4 }
  0x4f   : > { %303 = vst.msk [vmem:[#allocation5 + $0x8] sm:$0x1] %vm301_vm1, %v287_v37 }
  0x50   : > { %360 = vrot.lane.b32.xlu1 %v279_v30, %s978_s22  ;;  %322 = vrot.lane.b32.xlu0 %v278_v29, %s979_s26  ;;  %355 = vst.msk [vmem:[#allocation5 + $0xc] sm:$0x1] %vm301_vm1, %v293_v38 }
  0x51   : > { %345 = vrot.lane.b32.xlu2 %v279_v30, %s977_s20  ;;  %357 = vst.msk [vmem:[#allocation5 + $0x4] sm:$0x1] %vm317_vm3, %v287_v37 }
  0x52   : > { %306 = vst.msk [vmem:[#allocation5 + $0x8] sm:$0x1] %vm304_vm2, %v287_v37 }
  0x53   : > { %359 = vst.msk [vmem:[#allocation5 + $0xc] sm:$0x1] %vm304_vm2, %v293_v38 }
  0x58   : > { %326 = vrot.lane.b32.xlu1 %v287_v37, %s979_s26  ;;  %313 = vrot.lane.b32.xlu0 %v287_v37, %s978_s22 }
  0x59   : > { %338 = vrot.lane.b32.xlu2 %v287_v37, %s977_s20  ;;  %v521_v37 = vstv %s752_s5  ;;  %s905_s5 = scalar_lea.hbm %s1272_s2, 16 }
  0x60   : > { %376 = vrot.lane.b32.xlu1 %v293_v38, %s979_s26  ;;  %364 = vrot.lane.b32.xlu0 %v293_v38, %s978_s22  ;;  %s1206_s26 = sld [smem:[#allocation6 + $0xf]] }
  0x61   : > { %350 = vrot.lane.b32.xlu2 %v293_v38, %s977_s20  ;;  %s1200_s20 = sld [smem:[#allocation6 + $0xd]]  ;;  %v579_v38 = vstv %s758_s6 }
  0x66   : > { %v459_v32 = vstv %s1206_s26 }
  0x67   : > { %v503_v31 = vstv %s1200_s20  ;;  %s901_s20 = scalar_lea.hbm %s900_s3, 8 }
  0x68   : > { %p902_p4 = scmp.ne.s32.totalorder %s900_s3, %s901_s20  ;;  %p907_p8 = scmp.lt.s32.totalorder %s905_s5, %s901_s20 }
  0x6a   : > { %p903_p5 = pnand %p902_p4, %p1056_p9  ;;  %p908_p10 = por %p907_p8, %p906_p7 }
  0x6c   : > { %p904_p6 = pneg %p903_p5 }
  0x6e   : > { %p909_p12 = pnand %p908_p10, %p904_p6 }
  0xa3   : > { %v373_v39 = vpop.permute.xlu2 %372 }
  0xa4   : > { %375 = vst.msk [vmem:[#allocation4 + $0xe] sm:$0x1] %vm301_vm1, %v373_v39 }
  0xa5   : > { %380 = vst.msk [vmem:[#allocation4 + $0x6] sm:$0x1] %vm317_vm3, %v373_v39 }
  0xa6   : > { %382 = vst.msk [vmem:[#allocation4 + $0xe] sm:$0x1] %vm304_vm2, %v373_v39 }
  0xab   : > { %v346_v40 = vpop.permute.xlu2 %345 }
  0xac   : > { %384 = vst.msk [vmem:[#allocation4 + $0xf] sm:$0x1] %vm301_vm1, %v346_v40 }
  0xad   : > { %386 = vst.msk [vmem:[#allocation4 + $0x7] sm:$0x1] %vm317_vm3, %v346_v40 }
  0xb3   : > { %v339_v41 = vpop.permute.xlu2 %338 }
  0xb4   : > { %341 = vst.msk [vmem:[#allocation5 + $0xb] sm:$0x1] %vm301_vm1, %v339_v41 }
  0xb5   : > { %343 = vst.msk [vmem:[#allocation5 + $0x3] sm:$0x1] %vm317_vm3, %v339_v41 }
  0xba   : > { %v335_v42 = vpop.permute.xlu1 %334  ;;  %v309_v43 = vpop.permute.xlu0 %308 }
  0xbb   : > { %337 = vst.msk [vmem:[#allocation4 + $0xb] sm:$0x1] %vm301_vm1, %v335_v42  ;;  %v351_v44 = vpop.permute.xlu2 %350 }
  0xbc   : > { %342 = vst.msk [vmem:[#allocation4 + $0x3] sm:$0x1] %vm317_vm3, %v335_v42 }
  0xbd   : > { %311 = vst.msk [vmem:[#allocation4 + $0x9] sm:$0x1] %vm301_vm1, %v309_v43 }
  0xbe   : > { %318 = vst.msk [vmem:[#allocation4 + $0x1] sm:$0x1] %vm317_vm3, %v309_v43 }
  0xbf   : > { %320 = vst.msk [vmem:[#allocation4 + $0x9] sm:$0x1] %vm304_vm2, %v309_v43 }
  0xc0   : > { %348 = vst.msk [vmem:[#allocation4 + $0xb] sm:$0x1] %vm304_vm2, %v346_v40 }
  0xc1   : > { %353 = vst.msk [vmem:[#allocation5 + $0xb] sm:$0x1] %vm304_vm2, %v351_v44 }
  0xc2   : > { %v361_v45 = vpop.permute.xlu1 %360  ;;  %v323_v46 = vpop.permute.xlu0 %322  ;;  %385 = vst.msk [vmem:[#allocation5 + $0xf] sm:$0x1] %vm301_vm1, %v351_v44 }
  0xc3   : > { %363 = vst.msk [vmem:[#allocation4 + $0xd] sm:$0x1] %vm301_vm1, %v361_v45 }
  0xc4   : > { %368 = vst.msk [vmem:[#allocation4 + $0x5] sm:$0x1] %vm317_vm3, %v361_v45 }
  0xc5   : > { %370 = vst.msk [vmem:[#allocation4 + $0xd] sm:$0x1] %vm304_vm2, %v361_v45 }
  0xc6   : > { %325 = vst.msk [vmem:[#allocation4 + $0xa] sm:$0x1] %vm301_vm1, %v323_v46 }
  0xc7   : > { %330 = vst.msk [vmem:[#allocation4 + $0x2] sm:$0x1] %vm317_vm3, %v323_v46 }
  0xc8   : > { %332 = vst.msk [vmem:[#allocation4 + $0xa] sm:$0x1] %vm304_vm2, %v323_v46 }
  0xc9   : > { %387 = vst.msk [vmem:[#allocation5 + $0x7] sm:$0x1] %vm317_vm3, %v351_v44 }
  0xca   : > { %v327_v47 = vpop.permute.xlu1 %326  ;;  %v314_v48 = vpop.permute.xlu0 %313 }
  0xcb   : > { %329 = vst.msk [vmem:[#allocation5 + $0xa] sm:$0x1] %vm301_vm1, %v327_v47 }
  0xcc   : > { %331 = vst.msk [vmem:[#allocation5 + $0x2] sm:$0x1] %vm317_vm3, %v327_v47 }
  0xcd   : > { %333 = vst.msk [vmem:[#allocation5 + $0xa] sm:$0x1] %vm304_vm2, %v327_v47 }
  0xce   : > { %316 = vst.msk [vmem:[#allocation5 + $0x9] sm:$0x1] %vm301_vm1, %v314_v48  ;;  %v403_v51 = vld [vmem:[#allocation4] sm:$0xff] }
  0xcf   : > { %319 = vst.msk [vmem:[#allocation5 + $0x1] sm:$0x1] %vm317_vm3, %v314_v48  ;;  %v420_v52 = vmul.f32 %v419_v49, %v403_v51  ;;  %v1161_v53 = vld [vmem:[#allocation4 + $0x8] sm:$0xff]  ;;  %v541_v8 = vmul.f32 %v540_v62, %v403_v51  ;;  %v406_v9 = vmul.f32 %v405_v63, %v403_v51  ;;  %v483_v18 = vmul.f32 %v482_v6, %v403_v51 }
  0xd0   : > { %321 = vst.msk [vmem:[#allocation5 + $0x9] sm:$0x1] %vm304_vm2, %v314_v48  ;;  %v553_v54 = vmul.f32 %v552_v50, %v1161_v53  ;;  %v421_v55 = vmul.f32 %v419_v49, %v1161_v53  ;;  %v513_v60 = vmul.f32 %v512_v58, %v1161_v53  ;;  %v495_v61 = vmul.f32 %v494_v59, %v1161_v53 }
  0xd1   : > { %424 = vrot.lane.b32.xlu0 %v420_v52, %s980_s18  ;;  %v451_v16 = vmul.f32 %v450_v5, %v1161_v53  ;;  %v542_v17 = vmul.f32 %v540_v62, %v1161_v53  ;;  %v407_v21 = vmul.f32 %v405_v63, %v1161_v53  ;;  %v484_v22 = vmul.f32 %v482_v6, %v1161_v53 }
  0xd2   : > { %555 = vrot.lane.b32.xlu2 %v553_v54, %s980_s18  ;;  %426 = vrot.lane.b32.xlu1 %v421_v55, %s980_s18  ;;  %v377_v56 = vpop.permute.xlu1 %376  ;;  %v365_v57 = vpop.permute.xlu0 %364  ;;  %v571_v39 = vmul.f32 %v570_v36, %v1161_v53 }
  0xd3   : > { %379 = vst.msk [vmem:[#allocation5 + $0xe] sm:$0x1] %vm301_vm1, %v377_v56 }
  0xd4   : > { %381 = vst.msk [vmem:[#allocation5 + $0x6] sm:$0x1] %vm317_vm3, %v377_v56 }
  0xd5   : > { %383 = vst.msk [vmem:[#allocation5 + $0xe] sm:$0x1] %vm304_vm2, %v377_v56 }
  0xd6   : > { %367 = vst.msk [vmem:[#allocation5 + $0xd] sm:$0x1] %vm301_vm1, %v365_v57 }
  0xd7   : > { %369 = vst.msk [vmem:[#allocation5 + $0x5] sm:$0x1] %vm317_vm3, %v365_v57 }
  0xd8   : > { %371 = vst.msk [vmem:[#allocation5 + $0xd] sm:$0x1] %vm304_vm2, %v365_v57 }
  0xd9   : > { %515 = vrot.lane.b32.xlu0 %v513_v60, %s978_s22 }
  0xda   : > { %497 = vrot.lane.b32.xlu1 %v495_v61, %s980_s18 }
  0xde   : > { %v411_v7 = vld [vmem:[#allocation5] sm:$0xff] }
  0xdf   : > { %v436_v10 = vmul.f32 %v435_v0, %v411_v7  ;;  %v412_v11 = vld [vmem:[#allocation5 + $0x8] sm:$0xff]  ;;  %v547_v12 = vmul.f32 %v546_v1, %v411_v7  ;;  %v414_v13 = vmul.f32 %v413_v3, %v411_v7  ;;  %v489_v14 = vmul.f32 %v488_v4, %v411_v7 }
  0xe0   : > { %v437_v15 = vmul.f32 %v435_v0, %v412_v11  ;;  %v548_v19 = vmul.f32 %v546_v1, %v412_v11  ;;  %v415_v23 = vmul.f32 %v413_v3, %v412_v11  ;;  %v490_v25 = vmul.f32 %v488_v4, %v412_v11 }
  0xe1   : > { %440 = vrot.lane.b32.xlu2 %v436_v10, %s980_s18  ;;  %v549_v20 = vadd.f32 %v547_v12, %v541_v8  ;;  %v416_v24 = vadd.f32 %v414_v13, %v406_v9  ;;  %v491_v27 = vadd.f32 %v489_v14, %v483_v18  ;;  %v562_v33 = vmul.f32 %v561_v28, %v412_v11 }
  0xe2   : > { %442 = vrot.lane.b32.xlu0 %v437_v15, %s980_s18  ;;  %453 = vrot.lane.b32.xlu1 %v451_v16, %s978_s22  ;;  %v1216_v26 = vadd.f32 %v548_v19, %v542_v17  ;;  %v417_v29 = vadd.f32 %v415_v23, %v407_v21  ;;  %v492_v30 = vadd.f32 %v490_v25, %v484_v22 }
  0xe3   : > { %v504_v34 = vmul.f32 %v503_v31, %v412_v11  ;;  %v460_v35 = vmul.f32 %v459_v32, %v412_v11  ;;  %v522_v40 = vmul.f32 %v521_v37, %v412_v11  ;;  %v580_v41 = vmul.f32 %v579_v38, %v412_v11 }
  0xe9   : > { %564 = vrot.lane.b32.xlu2 %v562_v33, %s980_s18 }
  0xea   : > { %506 = vrot.lane.b32.xlu0 %v504_v34, %s980_s18  ;;  %462 = vrot.lane.b32.xlu1 %v460_v35, %s978_s22 }
  0xf1   : > { %573 = vrot.lane.b32.xlu2 %v571_v39, %s978_s22 }
  0xf2   : > { %524 = vrot.lane.b32.xlu0 %v522_v40, %s978_s22  ;;  %582 = vrot.lane.b32.xlu1 %v580_v41, %s978_s22  ;;  %s981_s22 = smov 17  }
 0x12c   : > { %v556_v43 = vpop.permute.xlu2 %555 }
 0x12d   : > { %v558_v1 = vadd.f32 %v556_v43, %v549_v20  ;;  %v559_v15 = vadd.f32 %v556_v43, %v1216_v26  ;;  %v389_v20 = vand.u32 127, %v207_v2 }
 0x12f   : > { %v394_v23 = vand.u32 15, %v389_v20 }
 0x131   : > { %vm467_vm8 = vcmp.ge.s32.totalorder %v394_v23, 1  ;;  %vm588_vm10 = vcmp.lt.s32.totalorder %v394_v23, 15 }
 0x13b   : > { %v441_v46 = vpop.permute.xlu2 %440 }
 0x143   : > { %v425_v42 = vpop.permute.xlu0 %424  ;;  %v565_v54 = vpop.permute.xlu2 %564 }
 0x144   : > { %v427_v44 = vpop.permute.xlu1 %426  ;;  %v567_v6 = vadd.f32 %v565_v54, %v558_v1  ;;  %v568_v16 = vadd.f32 %v565_v54, %v559_v15 }
 0x145   : > { %v429_v48 = vsel %vm428_vm4, %v425_v42, %v427_v44  ;;  %v433_v52 = vadd.f32 %v427_v44, %v417_v29 }
 0x146   : > { %v432_v51 = vadd.f32 %v429_v48, %v416_v24 }
 0x14b   : > { %v516_v45 = vpop.permute.xlu0 %515  ;;  %v574_v5 = vpop.permute.xlu2 %573 }
 0x14c   : > { %v498_v47 = vpop.permute.xlu1 %497  ;;  %v576_v7 = vadd.f32 %v574_v5, %v567_v6  ;;  %v577_v17 = vadd.f32 %v574_v5, %v568_v16 }
 0x14d   : > { %v500_v61 = vadd.f32 %v498_v47, %v491_v27  ;;  %v501_v62 = vadd.f32 %v498_v47, %v492_v30 }
 0x154   : > { %v443_v49 = vpop.permute.xlu0 %442  ;;  %v454_v50 = vpop.permute.xlu1 %453 }
 0x155   : > { %v444_v53 = vsel %vm428_vm4, %v441_v46, %v443_v49  ;;  %v448_v56 = vadd.f32 %v443_v49, %v433_v52 }
 0x156   : > { %v447_v55 = vadd.f32 %v444_v53, %v432_v51 }
 0x157   : > { %v457_v58 = vadd.f32 %v454_v50, %v448_v56 }
 0x158   : > { %v456_v57 = vadd.f32 %v454_v50, %v447_v55 }
 0x15c   : > { %v507_v59 = vpop.permute.xlu0 %506  ;;  %v463_v60 = vpop.permute.xlu1 %462 }
 0x15d   : > { %v465_v63 = vadd.f32 %v463_v60, %v456_v57  ;;  %v466_v0 = vadd.f32 %v463_v60, %v457_v58  ;;  %v509_v3 = vadd.f32 %v507_v59, %v500_v61  ;;  %v510_v4 = vadd.f32 %v507_v59, %v501_v62 }
 0x15f   : > { %472 = vrot.lane.b32.xlu2 %v465_v63, %s981_s22  ;;  %474 = vrot.lane.b32.xlu0 %v466_v0, %s981_s22  ;;  %v518_v8 = vadd.f32 %v516_v45, %v509_v3  ;;  %v519_v9 = vadd.f32 %v516_v45, %v510_v4 }
 0x164   : > { %v525_v10 = vpop.permute.xlu0 %524  ;;  %v583_v11 = vpop.permute.xlu1 %582 }
 0x165   : > { %v527_v12 = vadd.f32 %v525_v10, %v518_v8  ;;  %v528_v13 = vadd.f32 %v525_v10, %v519_v9  ;;  %v585_v14 = vadd.f32 %v583_v11, %v576_v7  ;;  %v586_v18 = vadd.f32 %v583_v11, %v577_v17 }
 0x167   : > { %531 = vrot.lane.b32.xlu1 %v527_v12, %s982_s7  ;;  %533 = vrot.lane.b32.xlu2 %v528_v13, %s982_s7 }
 0x168   : > { %592 = vrot.lane.b32.xlu0 %v585_v14, %s983_s8 }
 0x16f   : > { %594 = vrot.lane.b32.xlu1 %v586_v18, %s983_s8 }
 0x1b9   : > { %v473_v19 = vpop.permute.xlu2 %472 }
 0x1c1   : > { %v534_v24 = vpop.permute.xlu2 %533 }
 0x1d1   : > { %v475_v21 = vpop.permute.xlu0 %474 }
 0x1d2   : > { %v477_v25 = vsel %vm476_vm6, %v473_v19, %v475_v21 }
 0x1d3   : > { %v479_v27 = vsel %vm467_vm8, %v477_v25, 0.0 }
 0x1d9   : > { %v532_v22 = vpop.permute.xlu1 %531 }
 0x1da   : > { %v536_v26 = vsel %vm535_vm7, %v532_v22, %v534_v24  ;;  %v593_v28 = vpop.permute.xlu0 %592 }
 0x1db   : > { %v538_v30 = vadd.f32 %v536_v26, %v479_v27 }
 0x1e1   : > { %v595_v29 = vpop.permute.xlu1 %594 }
 0x1e2   : > { %v597_v31 = vsel %vm596_vm9, %v593_v28, %v595_v29 }
 0x1e3   : > { %v599_v32 = vsel %vm588_vm10, %v597_v31, 0.0 }
 0x1e4   : > { %v600_v2 = vadd.f32 %v599_v32, %v538_v30 }
 0x1e6   : > { %v759_v33 = vmul.f32 -1.442695, %v600_v2 }
 0x1e8   : > { %842 = vpow2.f32 %v759_v33 }
 0x1ee   : > { %v843_v34 = vpop.eup %842 }
 0x1ef   : > { %v604_v35 = vadd.f32 1.0, %v843_v34 }
 0x1f1   : > { %844 = vrcp.f32 %v604_v35  ;;  %v616_v39 = vand.u32 2147483648, %v604_v35  ;;  %v614_v41 = vand.u32 2147483647, %v604_v35  ;;  %vm610_vm12 = vweird.f32 %v604_v35 }
 0x1f3   : > { %v617_v43 = vor.u32 1.1754944e-38, %v616_v39  ;;  %vm615_vm14 = vcmp.eq.f32.partialorder %v614_v41, 8.507059e+37 }
 0x1f7   : > { %v845_v36 = vpop.eup %844 }
 0x1f8   : > { %v606_v37 = vmul.f32 %v845_v36, %v604_v35  ;;  %vm611_vm11 = vweird.f32 %v845_v36 }
 0x1f9   : > { %vm612_vm13 = vmor %vm610_vm12, %vm611_vm11 }
 0x1fa   : > { %v607_v38 = vsub.f32 1.0, %v606_v37 }
 0x1fc   : > { %v608_v40 = vmul.f32 %v845_v36, %v607_v38 }
 0x1fe   : > { %v609_v42 = vadd.f32 %v845_v36, %v608_v40 }
 0x200   : > { %v613_v44 = vsel %vm612_vm13, %v845_v36, %v609_v42 }
 0x201   : > { %v618_v45 = vsel %vm615_vm14, %v617_v43, %v613_v44 }
 0x202   : > { %620 = vst.msk [vmem:[%s200_s28] sm:$0xff] %vm296_vm5, %v618_v45 }
 0x203   : > { %912 = shalt.err (!%p909_p12)
}
 0x204   : > { %770 = dma.vmem_to_hbm [thread:$0]  (%p1056_p9), %s635_s29, 128, %s637_s30, %s622_s12  }
 0x205 PF: > { %s648_s19 = sand.u32 1, %s951_s9   ;;  %p777_p13 = pnand %p734_p3, %p1063_p11 }
 0x206   : > { %s649_s7 = scalar_lea.sflag [#allocation8], %s648_s19 }
 0x207   : > { %p778_p0 = pneg %p777_p13 }
 0x209   : > { %946 = dma.done.wait (%p778_p0), %s649_s7, 128  }
 0x20a   : > { %948 = vsyncadd (%p778_p0), %s649_s7, 4294967168  ;;  %s19_s14 = sadd.s32 1, %s971_s14   ;;  %s1279_s9 = smov %s955_s10 }
 0x20b   : > { %p16_p1 = scmp.ge.s32.totalorder %s19_s14, 4   ;;  %s1280_s10 = smov %s959_s11 }
 0x20c   : > { %s1281_s11 = smov %s1061_s24  ;;  %s1282_s12 = smov %s967_s13 }
 0x20d   : > { %s1283_s13 = smov %s1285_s17  ;;  %18 = sbr.rel (!%p16_p1) target bundleno = 7 (0x7), region = 92 }
 0x212   :  { %655 = vsyncpa [#allocation7], 1 }
 0x213   :  { %657 = vsyncpa [#allocation7 + $0x1], 1 }
 0x214   :  { %658 = vsyncpa [#allocation8], 1 }
 0x215   :  { %660 = vsyncpa [#allocation8 + $0x1], 1 }
 0x216   :  { %661 = vsyncpa [#allocation9], 1 }
 0x217   :  { %663 = vsyncpa [#allocation9 + $0x1], 1 }

</bundles_post_ra>
